<compile_context>
chip_gen: v5e
topology: v5e:2x2
jax: 0.10.0
libtpu: 0.0.40
codegen_flags: <defaults>
</compile_context>

<pallas_src>
import jax
import jax.numpy as jnp
from jax import lax
from jax.experimental import pallas as pl
from jax.experimental.pallas import tpu as pltpu


def _round_up(x: int, m: int) -> int:
    return (x + m - 1) // m * m


def policy_kernel(obs_ref, w_ref, b_ref, out_ref):
    # obs_ref: (tm, d_in) VMEM
    # w_ref  : (tn, d_in) VMEM  -- PyTorch (out_features, in_features) layout
    # b_ref  : (1, tn)    VMEM
    # out_ref: (tm, tn)   VMEM  (tn is a multiple of 128 -> lane-dense stores)
    logits = lax.dot_general(
        obs_ref[...], w_ref[...],
        dimension_numbers=(((1,), (1,)), ((), ())),   # contract d_in of both == obs @ W.T
        preferred_element_type=jnp.float32,
    )
    out_ref[...] = jnp.tanh(logits + b_ref[...]).astype(out_ref.dtype)


def policy_network_forward(obs, weight, bias, *, compute_dtype=None,
                           tm_cap=256, tn_cap=1024):
    """tanh(obs @ weight.T + bias) via Pallas.

    obs: (B, latent_dim); weight: (dict_size, latent_dim) [PyTorch layout];
    bias: (dict_size,). compute_dtype=jnp.bfloat16 optionally casts the matmul
    inputs (f32 accumulation) for v6e/v7x; leave None (f32) on v5e.
    """
    B, d_in = obs.shape
    d_out, d_in_w = weight.shape
    assert d_in_w == d_in, "weight must be (dict_size, latent_dim)"
    out_dtype = obs.dtype

    obs_c = obs.astype(compute_dtype) if compute_dtype is not None else obs
    w_c = weight.astype(compute_dtype) if compute_dtype is not None else weight

    # --- Tile sizing (v7x-safe VMEM budget, lane/sublane alignment) -----------
    # tm: multiple of 8 sublanes; tn: multiple of 128 lanes. Caps keep the
    # double-buffered working set (obs + weight + out tiles) well under 32 MiB.
    B_p = _round_up(B, 8)
    tm = min(tm_cap, B_p)
    B_p = _round_up(B_p, tm)

    d_out_p = _round_up(d_out, 128)
    tn = min(tn_cap, d_out_p)
    d_out_p = _round_up(d_out_p, tn)

    # --- Zero padding (only materialized when shapes are not already aligned) -
    if B_p != B:
        obs_c = jnp.pad(obs_c, ((0, B_p - B), (0, 0)))
    if d_out_p != d_out:
        w_c = jnp.pad(w_c, ((0, d_out_p - d_out), (0, 0)))
        bias_p = jnp.pad(bias, (0, d_out_p - d_out))
    else:
        bias_p = bias
    b2d = bias_p.reshape(1, d_out_p).astype(jnp.float32)

    grid = (B_p // tm, d_out_p // tn)

    cost = pl.CostEstimate(
        flops=2 * B * d_in * d_out,
        transcendentals=B * d_out,
        bytes_accessed=4 * (B * d_in + d_in * d_out + B * d_out),
    )

    out_p = pl.pallas_call(
        policy_kernel,
        out_shape=jax.ShapeDtypeStruct((B_p, d_out_p), out_dtype),
        grid_spec=pltpu.PrefetchScalarGridSpec(
            num_scalar_prefetch=0,
            grid=grid,
            in_specs=[
                pl.BlockSpec((tm, d_in), lambda i, j: (i, 0)),   # obs row-block, reused over j
                pl.BlockSpec((tn, d_in), lambda i, j: (j, 0)),   # weight rows for this d_out tile
                pl.BlockSpec((1, tn), lambda i, j: (0, j)),      # bias slice
            ],
            out_specs=pl.BlockSpec((tm, tn), lambda i, j: (i, j)),
        ),
        compiler_params=pltpu.CompilerParams(
            dimension_semantics=("parallel", "parallel"),        # both axes independent
        ),
        cost_estimate=cost,
    )(obs_c, w_c, b2d)

    # Slice off padding (no-op when shapes were already aligned).
    return out_p[:B, :d_out]


if __name__ == "__main__":
    # Small shapes consistent with the module: latent_dim=32, dict_size=64, batch=8.
    batch, latent_dim, dict_size = 8, 32, 64

    key = jax.random.PRNGKey(0)
    k_obs, k_w, k_b = jax.random.split(key, 3)

    obs = jax.random.normal(k_obs, (batch, latent_dim), dtype=jnp.float32)
    # Deterministic init mimicking nn.Linear's uniform(-1/sqrt(fan_in), 1/sqrt(fan_in))
    bound = 1.0 / jnp.sqrt(jnp.float32(latent_dim))
    weight = jax.random.uniform(
        k_w, (dict_size, latent_dim), minval=-bound, maxval=bound, dtype=jnp.float32
    )
    bias = jax.random.uniform(
        k_b, (dict_size,), minval=-bound, maxval=bound, dtype=jnp.float32
    )

    out = policy_network_forward(obs, weight, bias)   # f32 path (tight tolerance)
    out = jax.block_until_ready(out)

    # Reference check in plain JAX (same math as the PyTorch module).
    ref = jnp.tanh(obs @ weight.T + bias)
    assert out.shape == (batch, dict_size)
    assert jnp.allclose(out, ref, atol=1e-5, rtol=1e-5)

    print("KERNEL_OK")
</pallas_src>

<mosaic_0001>
module attributes {stable_mosaic.version = 11 : i64} {
  func.func @policy_kernel(%arg0: i32, %arg1: i32, %arg2: memref<8x32xf32, #tpu.memory_space<vmem>>, %arg3: memref<128x32xf32, #tpu.memory_space<vmem>>, %arg4: memref<1x128xf32, #tpu.memory_space<vmem>>, %arg5: memref<8x128xf32, #tpu.memory_space<vmem>>) attributes {dimension_semantics = [#tpu.dimension_semantics<parallel>, #tpu.dimension_semantics<parallel>], iteration_bounds = array<i64: 1, 1>, scalar_prefetch = 0 : i64, scratch_operands = 0 : i64, tpu.core_type = #tpu.core_type<tc>, window_params = [{transform_indices = @transform_0, window_bounds = array<i64: 8, 32>}, {transform_indices = @transform_1, window_bounds = array<i64: 128, 32>}, {transform_indices = @transform_2, window_bounds = array<i64: 1, 128>}, {transform_indices = @transform_3, window_bounds = array<i64: 8, 128>}]} {
    %c0 = arith.constant 0 : index
    %c0_0 = arith.constant 0 : index
    %0 = vector.load %arg2[%c0, %c0_0] : memref<8x32xf32, #tpu.memory_space<vmem>>, vector<8x32xf32>
    %c0_1 = arith.constant 0 : index
    %c0_2 = arith.constant 0 : index
    %1 = vector.load %arg3[%c0_1, %c0_2] : memref<128x32xf32, #tpu.memory_space<vmem>>, vector<128x32xf32>
    %cst = arith.constant dense<0.000000e+00> : vector<8x128xf32>
    %2 = tpu.matmul %0, %1, %cst {dimension_numbers = #tpu.dot_dimension_numbers<[1], [1], [0], [0], [0, 0, 1, 0], [], []>} : vector<8x32xf32>, vector<128x32xf32>, vector<8x128xf32> -> vector<8x128xf32>
    %c0_3 = arith.constant 0 : index
    %c0_4 = arith.constant 0 : index
    %3 = vector.load %arg4[%c0_3, %c0_4] : memref<1x128xf32, #tpu.memory_space<vmem>>, vector<1x128xf32>
    %4 = vector.broadcast %3 : vector<1x128xf32> to vector<8x128xf32>
    %5 = arith.addf %2, %4 : vector<8x128xf32>
    %6 = math.tanh %5 : vector<8x128xf32>
    %c0_5 = arith.constant 0 : index
    %c0_6 = arith.constant 0 : index
    %7 = vector.load %arg5[%c0_5, %c0_6] : memref<8x128xf32, #tpu.memory_space<vmem>>, vector<8x128xf32>
    tpu.vector_store %arg5[%c0_5, %c0_6], %6 {strides = array<i32>} : memref<8x128xf32, #tpu.memory_space<vmem>>, vector<8x128xf32>,
    return
  }
  func.func @transform_0(%arg0: i32, %arg1: i32) -> (i32, i32) {
    %c0_i32 = arith.constant 0 : i32
    %c0_i32_0 = arith.constant 0 : i32
    return %arg0, %c0_i32 : i32, i32
  }
  func.func @transform_1(%arg0: i32, %arg1: i32) -> (i32, i32) {
    %c0_i32 = arith.constant 0 : i32
    %c0_i32_0 = arith.constant 0 : i32
    return %arg1, %c0_i32 : i32, i32
  }
  func.func @transform_2(%arg0: i32, %arg1: i32) -> (i32, i32) {
    %c0_i32 = arith.constant 0 : i32
    %c0_i32_0 = arith.constant 0 : i32
    return %c0_i32, %arg1 : i32, i32
  }
  func.func @transform_3(%arg0: i32, %arg1: i32) -> (i32, i32) {
    %c0_i32 = arith.constant 0 : i32
    return %arg0, %arg1 : i32, i32
  }
}

</mosaic_0001>

<bundles_post_ra>
// kernel: tpu_custom_call.1
= control target key start
LH: loop header
LB: loop body
LE: loop exit
PB: predicated region body
PF: predicated region fallthrough
CT: control target
= control target key end

     0   :  { %vm36_vm0 = vcmask 261120   ;;  %s268_s0 = inlined_call_operand.vmem [shape: f32[8,32], index: 0, kind: input, shape index: {}]   ;;  %s269_s1 = inlined_call_operand.vmem [shape: f32[128,32], index: 1, kind: input, shape index: {}]   ;;  %s270_s2 = inlined_call_operand.vmem [shape: f32[1,128], index: 2, kind: input, shape index: {}]   ;;  %s271_s3 = inlined_call_operand.hbm [shape: f32[8,128], index: 3, kind: output, shape index: {}]  }
   0x1   :  { %v31_v0 = vld [vmem:[%s269_s1 + $0x78] sm:$0xff]  ;;  %v30_v1 = vld [vmem:[%s269_s1 + $0x70] sm:$0xff] }
   0x2   :  { %126 = vmatpush.xpose.msk.msra.mxu0 %vm36_vm0, %v31_v0 }
   0x3   :  { %8 = vsyncpa [#allocation3], 0  ;;  %v29_v2 = vld [vmem:[%s269_s1 + $0x68] sm:$0xff]  ;;  %v28_v3 = vld [vmem:[%s269_s1 + $0x60] sm:$0xff]  ;;  %s173_s21 = smov [#allocation2]  }
   0x4   :  { %v27_v4 = vld [vmem:[%s269_s1 + $0x58] sm:$0xff]  ;;  %v26_v5 = vld [vmem:[%s269_s1 + $0x50] sm:$0xff]  ;;  %v25_v6 = vld [vmem:[%s269_s1 + $0x48] sm:$0xff]  ;;  %s115_s22 = sshll.u32 %s173_s21, 4  ;;  %s116_s22 = int_to_ptr.vmem [resolvable:$true] %s115_s22 }
   0x5   :  { %v24_v7 = vld [vmem:[%s269_s1 + $0x40] sm:$0xff]  ;;  %v23_v8 = vld [vmem:[%s269_s1 + $0x38] sm:$0xff]  ;;  %v22_v9 = vld [vmem:[%s269_s1 + $0x30] sm:$0xff] }
   0x6   :  { %127 = vmatpush.xpose.msk.msra.mxu0 %vm36_vm0, %v30_v1  ;;  %v21_v10 = vld [vmem:[%s269_s1 + $0x28] sm:$0xff]  ;;  %v20_v11 = vld [vmem:[%s269_s1 + $0x20] sm:$0xff]  ;;  %v19_v12 = vld [vmem:[%s269_s1 + $0x18] sm:$0xff] }
   0x7   :  { %v18_v13 = vld [vmem:[%s269_s1 + $0x10] sm:$0xff]  ;;  %v17_v14 = vld [vmem:[%s269_s1 + $0x8] sm:$0xff]  ;;  %v16_v15 = vld [vmem:[%s269_s1] sm:$0xff]  ;;  %s117_s1 = sshll.u32 %s271_s3, 4  ;;  %s118_s1 = int_to_ptr.hbm [resolvable:$true] %s117_s1 }
   0x8   :  { %v15_v16 = vld [vmem:[%s268_s0] sm:$0xff] }
   0x9   :  { %v144_v17 = vld [vmem:[%s270_s2] ss:$0 sm:$0xff] }
   0xa   :  { %128 = vmatpush.xpose.msk.msra.mxu0 %vm36_vm0, %v29_v2 }
   0xe   :  { %129 = vmatpush.xpose.msk.msra.mxu0 %vm36_vm0, %v28_v3 }
  0x12   :  { %130 = vmatpush.xpose.msk.msra.mxu0 %vm36_vm0, %v27_v4 }
  0x16   :  { %131 = vmatpush.xpose.msk.msra.mxu0 %vm36_vm0, %v26_v5 }
  0x1a   :  { %132 = vmatpush.xpose.msk.msra.mxu0 %vm36_vm0, %v25_v6 }
  0x1e   :  { %133 = vmatpush.xpose.msk.msra.mxu0 %vm36_vm0, %v24_v7 }
  0x22   :  { %134 = vmatpush.xpose.msk.msra.mxu0 %vm36_vm0, %v23_v8 }
  0x26   :  { %135 = vmatpush.xpose.msk.msra.mxu0 %vm36_vm0, %v22_v9 }
  0x2a   :  { %136 = vmatpush.xpose.msk.msra.mxu0 %vm36_vm0, %v21_v10 }
  0x2e   :  { %137 = vmatpush.xpose.msk.msra.mxu0 %vm36_vm0, %v20_v11 }
  0x32   :  { %138 = vmatpush.xpose.msk.msra.mxu0 %vm36_vm0, %v19_v12 }
  0x36   :  { %139 = vmatpush.xpose.msk.msra.mxu0 %vm36_vm0, %v18_v13 }
  0x3a   :  { %140 = vmatpush.xpose.msk.msra.mxu0 %vm36_vm0, %v17_v14 }
  0x3e   :  { %141 = vmatpush.xpose.msk.msra.mxu0 %vm36_vm0, %v16_v15 }
  0x41   :  { %142 = vmatmul.msk.f32.vlgmr.msra.gmra.mxu0 %vm36_vm0, %v15_v16 }
  0xbe   :  { %v105_v18 = vpop.f32.mrf.mxu0 }
  0xbf   :  { %v106_v19 = vadd.f32 %v144_v17, %v105_v18 }
  0xc1   :  { %145 = vtanh.f32 %v106_v19 }
  0xc7   :  { %v146_v20 = vpop.eup %145 }
  0xc8   :  { %109 = vst [vmem:[#allocation2] sm:$0xff] %v146_v20 }
  0xc9   :  { %120 = dma.vmem_to_hbm [thread:$0]  %s116_s22, 128, %s118_s1, [#allocation3]  }
  0xca   :  { %171 = dma.done.wait [#allocation3], 128  }
  0xcb   :  { %172 = vsyncadd [#allocation3], 4294967168 }
  0xcc   :  { %125 = vsyncpa [#allocation3], 1 }

</bundles_post_ra>
